<compile_context>
chip_gen: v7x
topology: tpu7x:2x2x1
jax: 0.10.0
libtpu: 0.0.40
codegen_flags: <defaults>
</compile_context>

<pallas_src>
import functools

import jax
import jax.numpy as jnp
from jax.experimental import pallas as pl
from jax.experimental.pallas import tpu as pltpu


def _round_up(x: int, m: int) -> int:
    return ((x + m - 1) // m) * m


def _ns_loss_kernel(x_ref, w_ref, out_ref):
    """One grid step = one group of G examples.

    x_ref   : [1,      G, D_pad]  context embeddings of the group
    w_ref   : [n_rows, G, D_pad]  gathered output rows (row 0 = target,
                                  rows 1..n_samples = negatives)
    out_ref : [1, 1, G]           per-example sum of log-sigmoid terms
    """
    x = x_ref[...]                                  # [1, G, D]
    w = w_ref[...]                                  # [n_rows, G, D]

    # Multiply in the input dtype (bf16 VPU path on v6e/v7x), accumulate the
    # lane reduce in f32.
    prod = (x * w).astype(jnp.float32)              # [n_rows, G, D]
    scores = jnp.sum(prod, axis=-1)                 # [n_rows, G]

    # +1 for the target row, -1 for negative rows (vectorized over the tile).
    row_id = jax.lax.broadcasted_iota(jnp.int32, scores.shape, 0)
    sign = jnp.where(row_id == 0, jnp.float32(1.0), jnp.float32(-1.0))
    s = sign * scores

    # Numerically stable log(sigmoid(s)) = min(s, 0) - log1p(exp(-|s|)),
    # one vectorized EUP pass over the whole [n_rows, G] tile.
    logsig = jnp.minimum(s, 0.0) - jnp.log1p(jnp.exp(-jnp.abs(s)))

    # Per-example partial loss, written once per group (lane-dense row).
    out_ref[...] = jnp.sum(logsig, axis=0).reshape(out_ref.shape)


def negative_sampling_loss(input_vectors, output_vectors, target_indices,
                           vocab_size, *, n_samples=5, key=None,
                           group_size=None):
    """JAX/Pallas equivalent of NegativeSamplingLoss.forward.

    input_vectors  : [B, D] float (f32 or bf16)
    output_vectors : [V, D] float (f32 or bf16)
    target_indices : [B]    int
    Returns a scalar float32 loss.
    """
    B, D = input_vectors.shape
    V, D2 = output_vectors.shape
    assert V == vocab_size and D2 == D

    if key is None:
        # NOTE: fixed default key => identical negatives every call; pass a
        # fresh key per training step.
        key = jax.random.PRNGKey(0)

    # torch.multinomial over uniform weights with replacement == uniform randint.
    neg_indices = jax.random.randint(key, (B, n_samples), 0, vocab_size,
                                     dtype=jnp.int32)
    n_rows = 1 + n_samples
    idx = jnp.concatenate(
        [target_indices.astype(jnp.int32)[:, None], neg_indices], axis=1
    )                                                           # [B, n_rows]

    # Pre-gather only the rows each example actually needs (XLA gather), one
    # dense slab instead of B*n_rows tiny per-row DMAs inside the kernel.
    w_g = jnp.take(output_vectors, idx, axis=0)                 # [B, n_rows, D]
    w_g = jnp.transpose(w_g, (1, 0, 2))                         # [n_rows, B, D]

    # Tiling: G examples per grid step (multiple of 8 sublanes), D padded to a
    # multiple of 128 lanes. Zero padding does not change dot products; padded
    # examples are sliced off before the final reduction.
    if group_size is None:
        G = min(128, _round_up(B, 8))
    else:
        G = _round_up(min(group_size, max(B, 1)), 8)
    B_pad = _round_up(B, G)
    D_pad = _round_up(D, 128)
    num_groups = B_pad // G

    x_p = jnp.zeros((1, B_pad, D_pad), input_vectors.dtype)
    x_p = x_p.at[0, :B, :D].set(input_vectors)
    w_p = jnp.zeros((n_rows, B_pad, D_pad), output_vectors.dtype)
    w_p = w_p.at[:, :B, :D].set(w_g)

    partial = pl.pallas_call(
        _ns_loss_kernel,
        out_shape=jax.ShapeDtypeStruct((num_groups, 1, G), jnp.float32),
        grid=(num_groups,),
        in_specs=[
            pl.BlockSpec((1, G, D_pad), lambda g: (0, g, 0)),
            pl.BlockSpec((n_rows, G, D_pad), lambda g: (0, g, 0)),
        ],
        out_specs=pl.BlockSpec((1, 1, G), lambda g: (g, 0, 0)),
        compiler_params=pltpu.CompilerParams(
            dimension_semantics=("parallel",)),
    )(x_p, w_p)

    # Tiny final reduction (B values) in the wrapper; drop padded examples.
    per_example = partial.reshape(B_pad)[:B]
    return -jnp.sum(per_example) / jnp.float32(B)


if __name__ == "__main__":
    B, D, V = 8, 32, 128
    n_samples = 5

    root = jax.random.PRNGKey(0)
    k_in, k_out, k_tgt, k_neg = jax.random.split(root, 4)

    input_vectors = jax.random.normal(k_in, (B, D), dtype=jnp.float32)
    output_vectors = jax.random.normal(k_out, (V, D), dtype=jnp.float32) * 0.1
    target_indices = jax.random.randint(k_tgt, (B,), 0, V, dtype=jnp.int32)

    loss = negative_sampling_loss(input_vectors, output_vectors,
                                  target_indices, V,
                                  n_samples=n_samples, key=k_neg)
    loss = jax.block_until_ready(loss)

    # Pure-JAX reference using the exact same negative samples.
    neg = jax.random.randint(k_neg, (B, n_samples), 0, V, dtype=jnp.int32)
    ls = jax.nn.log_sigmoid
    pos = jnp.sum(ls(jnp.sum(input_vectors * output_vectors[target_indices],
                             axis=1)))
    negv = output_vectors[neg]                                   # [B, n, D]
    negs = jnp.einsum("bnd,bd->bn", negv, input_vectors)         # [B, n]
    negl = jnp.sum(ls(-negs))
    ref = -(pos + negl) / B

    assert jnp.allclose(loss, ref, rtol=1e-5, atol=1e-5), (loss, ref)
    print("KERNEL_OK")
</pallas_src>

<mosaic_0001>
module attributes {stable_mosaic.version = 11 : i64} {
  func.func @_ns_loss_kernel(%arg0: i32, %arg1: memref<1x8x128xf32, #tpu.memory_space<vmem>>, %arg2: memref<6x8x128xf32, #tpu.memory_space<vmem>>, %arg3: memref<1x1x8xf32, #tpu.memory_space<vmem>>) attributes {dimension_semantics = [#tpu.dimension_semantics<parallel>], iteration_bounds = array<i64: 1>, scalar_prefetch = 0 : i64, scratch_operands = 0 : i64, tpu.core_type = #tpu.core_type<tc>, window_params = [{transform_indices = @transform_0, window_bounds = array<i64: 1, 8, 128>}, {transform_indices = @transform_1, window_bounds = array<i64: 6, 8, 128>}, {transform_indices = @transform_2, window_bounds = array<i64: 1, 1, 8>}]} {
    %c0 = arith.constant 0 : index
    %c0_0 = arith.constant 0 : index
    %c0_1 = arith.constant 0 : index
    %0 = vector.load %arg1[%c0, %c0_0, %c0_1] : memref<1x8x128xf32, #tpu.memory_space<vmem>>, vector<1x8x128xf32>
    %c0_2 = arith.constant 0 : index
    %c0_3 = arith.constant 0 : index
    %c0_4 = arith.constant 0 : index
    %1 = vector.load %arg2[%c0_2, %c0_3, %c0_4] : memref<6x8x128xf32, #tpu.memory_space<vmem>>, vector<6x8x128xf32>
    %2 = vector.broadcast %0 : vector<1x8x128xf32> to vector<6x8x128xf32>
    %3 = arith.mulf %2, %1 : vector<6x8x128xf32>
    %cst = arith.constant dense<0.000000e+00> : vector<6x8xf32>
    %4 = vector.multi_reduction <add>, %3, %cst [2] : vector<6x8x128xf32> to vector<6x8xf32>
    %5 = tpu.iota {dimensions = array<i32: 0>} : vector<6x8xi32>
    %c0_i32 = arith.constant 0 : i32
    %6 = vector.broadcast %c0_i32 : i32 to vector<6x8xi32>
    %7 = arith.cmpi eq, %5, %6 : vector<6x8xi32>
    %cst_5 = arith.constant 1.000000e+00 : f32
    %cst_6 = arith.constant -1.000000e+00 : f32
    %8 = vector.broadcast %cst_5 : f32 to vector<6x8xf32>
    %9 = vector.broadcast %cst_6 : f32 to vector<6x8xf32>
    %10 = arith.select %7, %8, %9 : vector<6x8xi1>, vector<6x8xf32>
    %11 = arith.mulf %10, %4 : vector<6x8xf32>
    %cst_7 = arith.constant 0.000000e+00 : f32
    %12 = vector.broadcast %cst_7 : f32 to vector<6x8xf32>
    %13 = arith.minimumf %11, %12 : vector<6x8xf32>
    %14 = math.absf %11 : vector<6x8xf32>
    %cst_8 = arith.constant 0.000000e+00 : f32
    %15 = vector.broadcast %cst_8 : f32 to vector<6x8xf32>
    %16 = arith.subf %15, %14 : vector<6x8xf32>
    %17 = math.exp %16 : vector<6x8xf32>
    %18 = math.log1p %17 : vector<6x8xf32>
    %19 = arith.subf %13, %18 : vector<6x8xf32>
    %cst_9 = arith.constant dense<0.000000e+00> : vector<8xf32>
    %20 = vector.multi_reduction <add>, %19, %cst_9 [0] : vector<6x8xf32> to vector<8xf32>
    %21 = vector.shape_cast %20 : vector<8xf32> to vector<1x1x8xf32>
    %c0_10 = arith.constant 0 : index
    %c0_11 = arith.constant 0 : index
    %c0_12 = arith.constant 0 : index
    %22 = vector.load %arg3[%c0_10, %c0_11, %c0_12] : memref<1x1x8xf32, #tpu.memory_space<vmem>>, vector<1x1x8xf32>
    tpu.vector_store %arg3[%c0_10, %c0_11, %c0_12], %21 {strides = array<i32>} : memref<1x1x8xf32, #tpu.memory_space<vmem>>, vector<1x1x8xf32>,
    return
  }
  func.func @transform_0(%arg0: i32) -> (i32, i32, i32) {
    %c0_i32 = arith.constant 0 : i32
    %c0_i32_0 = arith.constant 0 : i32
    %c0_i32_1 = arith.constant 0 : i32
    return %c0_i32, %arg0, %c0_i32_0 : i32, i32, i32
  }
  func.func @transform_1(%arg0: i32) -> (i32, i32, i32) {
    %c0_i32 = arith.constant 0 : i32
    %c0_i32_0 = arith.constant 0 : i32
    %c0_i32_1 = arith.constant 0 : i32
    return %c0_i32, %arg0, %c0_i32_0 : i32, i32, i32
  }
  func.func @transform_2(%arg0: i32) -> (i32, i32, i32) {
    %c0_i32 = arith.constant 0 : i32
    %c0_i32_0 = arith.constant 0 : i32
    %c0_i32_1 = arith.constant 0 : i32
    return %arg0, %c0_i32, %c0_i32_0 : i32, i32, i32
  }
}

</mosaic_0001>

<bundles_post_ra>
// kernel: tpu_custom_call.1
= control target key start
LH: loop header
LB: loop body
LE: loop exit
PB: predicated region body
PF: predicated region fallthrough
CT: control target
= control target key end

     0   :  { %7 = vsyncpa [#allocation3], 0  ;;  %s298_s0 = inlined_call_operand.hbm [shape: f32[1,8,128], index: 0, kind: input, shape index: {}]   ;;  %s299_s1 = inlined_call_operand.hbm [shape: f32[6,8,128], index: 1, kind: input, shape index: {}]   ;;  %s300_s2 = inlined_call_operand.hbm [shape: f32[1,1,8], index: 2, kind: output, shape index: {}]  }
   0x1   :  { %8 = vsyncpa [#allocation6], 0 }
   0x2   :  { %9 = vsyncpa [#allocation4], 0  ;;  %s234_s9 = smov [#allocation2]   ;;  %s235_s11 = smov [#allocation5]  }
   0x3   :  { %s16_s10 = sshll.u32 %s234_s9, 4  ;;  %s25_s12 = sshll.u32 %s235_s11, 4  ;;  %s17_s10 = int_to_ptr.vmem [resolvable:$true] %s16_s10  ;;  %s255_s12 = int_to_ptr.vmem [resolvable:$true] %s25_s12 }
   0x4   :  { %s162_s15 = scalar_lea.hbm %s298_s0, 128 }
   0x5   :  { %p163_p0 = scmp.ne.s32.totalorder %s298_s0, %s162_s15  ;;  %p166_p1 = scmp.lt.u32.totalorder %s162_s15, %s298_s0 }
   0x7   :  { %p168_p2 = pnand %p166_p1, %p163_p0 }
   0x9   :  { %171 = shalt.err (!%p168_p2)
}
   0xa   :  { %s172_s20 = scalar_lea.vmem %s17_s10, 128  ;;  %p177_p4 = scmp.lt.s32.totalorder %s17_s10, %s17_s10 }
   0xb   :  { %p173_p3 = scmp.ne.s32.totalorder %s17_s10, %s172_s20  ;;  %p178_p5 = scmp.lt.s32.totalorder %s172_s20, %s172_s20 }
   0xd   :  { %p179_p6 = por %p178_p5, %p177_p4 }
   0xf   :  { %p180_p7 = pnand %p179_p6, %p173_p3 }
  0x11   :  { %183 = shalt.err (!%p180_p7)
}
  0x12   :  { %19 = dma.hbm_to_vmem [thread:$0]  %s298_s0, 128, %s17_s10, [#allocation3]  }
  0x13   :  { %s184_s25 = scalar_lea.hbm %s299_s1, 768 }
  0x14   :  { %p185_p8 = scmp.ne.s32.totalorder %s299_s1, %s184_s25  ;;  %p188_p9 = scmp.lt.u32.totalorder %s184_s25, %s299_s1 }
  0x16   :  { %p190_p10 = pnand %p188_p9, %p185_p8 }
  0x18   :  { %193 = shalt.err (!%p190_p10)
}
  0x19   :  { %s194_s30 = scalar_lea.vmem %s255_s12, 768  ;;  %p199_p12 = scmp.lt.s32.totalorder %s255_s12, %s255_s12 }
  0x1a   :  { %p195_p11 = scmp.ne.s32.totalorder %s255_s12, %s194_s30  ;;  %p200_p13 = scmp.lt.s32.totalorder %s194_s30, %s194_s30 }
  0x1c   :  { %p201_p0 = por %p200_p13, %p199_p12 }
  0x1e   :  { %p202_p1 = pnand %p201_p0, %p195_p11 }
  0x20   :  { %205 = shalt.err (!%p202_p1)
}
  0x21   :  { %s236_s0 = smov 128   ;;  %s237_s3 = smov 8  }
  0x22   :  { %31 = dma.hbm_to_vmem [thread:$0]  %s299_s1, 768, %s255_s12, [#allocation6], %s236_s0, %s236_s0, %s237_s3  }
  0x23   :  { %228 = dma.done.wait [#allocation3], 128  }
  0x24   :  { %229 = vsyncadd [#allocation3], 4294967168 }
  0x25   :  { %230 = dma.done.wait [#allocation6], 768  }
  0x26   :  { %231 = vsyncadd [#allocation6], 4294966528  ;;  %v38_v0 = vld [vmem:[#allocation2] sm:$0xff]  ;;  %v39_v1 = vld [vmem:[#allocation5] sm:$0xff]  ;;  %v63_v13 = vlaneseq  ;;  %vm99_vm0 = vcmask 1041409   ;;  %vm101_vm1 = vcmask 1042434  }
  0x27   :  { %v41_v2 = vld [vmem:[#allocation5 + $0x10] sm:$0xff]  ;;  %v45_v3 = vmul.f32 %v39_v1, %v38_v0  ;;  %v40_v5 = vld [vmem:[#allocation5 + $0x8] sm:$0xff]  ;;  %v42_v6 = vld [vmem:[#allocation5 + $0x18] sm:$0xff]  ;;  %vm103_vm2 = vcmask 1043459   ;;  %vm105_vm4 = vcmask 1044484   ;;  %vm107_vm5 = vcmask 1045509  }
  0x28   :  { %v47_v4 = vmul.f32 %v41_v2, %v38_v0  ;;  %v46_v7 = vmul.f32 %v40_v5, %v38_v0  ;;  %v48_v8 = vmul.f32 %v42_v6, %v38_v0  ;;  %v43_v9 = vld [vmem:[#allocation5 + $0x20] sm:$0xff]  ;;  %v44_v10 = vld [vmem:[#allocation5 + $0x28] sm:$0xff]  ;;  %v64_v14 = vshrl.u32 %v63_v13, 7  ;;  %s239_s1 = smov [#allocation7]  }
  0x29   :  { %51 = vadd.xlane.f32.xlu0 %v45_v3  ;;  %v49_v11 = vmul.f32 %v43_v9, %v38_v0  ;;  %v50_v12 = vmul.f32 %v44_v10, %v38_v0  ;;  %v74_v15 = vand.u32 127, %v63_v13  ;;  %v238_v32 = vmov -1.0   ;;  %s142_s6 = sshll.u32 %s239_s1, 4  ;;  %s143_s6 = int_to_ptr.vmem [resolvable:$true] %s142_s6 }
  0x2a   :  { %55 = vadd.xlane.f32.xlu1 %v47_v4  ;;  %vm65_vm3 = vcmp.eq.s32.totalorder %v64_v14, 0  ;;  %vm126_vm7 = vcmask 62464   ;;  %vm134_vm8 = vcmask 57344   ;;  %s206_s7 = scalar_lea.vmem %s143_s6, 16  ;;  %s210_s8 = scalar_lea.vmem %s143_s6, 32 }
  0x2b   :  { %v77_v18 = vsub.s32 %v74_v15, %v64_v14  ;;  %v66_v33 = vsel %vm65_vm3, 1.0, %v238_v32  ;;  %p207_p2 = scmp.ne.s32.totalorder %s143_s6, %s206_s7  ;;  %p211_p3 = scmp.lt.s32.totalorder %s143_s6, %s143_s6 }
  0x2c   :  { %p212_p4 = scmp.lt.s32.totalorder %s210_s8, %s206_s7 }
  0x2d   :  { %53 = vadd.xlane.f32.xlu0 %v46_v7 }
  0x2e   :  { %57 = vadd.xlane.f32.xlu1 %v48_v8  ;;  %p213_p5 = por %p212_p4, %p211_p3 }
  0x30   :  { %p214_p6 = pnand %p213_p5, %p207_p2 }
  0x31   :  { %59 = vadd.xlane.f32.xlu0 %v49_v11 }
  0x32   :  { %61 = vadd.xlane.f32.xlu1 %v50_v12 }
  0xb6   :  { %v52_v16 = vpop.xlane.xlu0 %51 }
  0xb7   :  { %v56_v17 = vpop.xlane.xlu1 %55  ;;  %v78_v21 = vrot.slane %v52_v16, %v77_v18 }
  0xb8   :  { %v86_v24 = vrot.slane %v56_v17, %v77_v18 }
  0xba   :  { %v54_v19 = vpop.xlane.xlu0 %53 }
  0xbb   :  { %v58_v20 = vpop.xlane.xlu1 %57  ;;  %v82_v22 = vrot.slane %v54_v19, %v77_v18 }
  0xbc   :  { %v90_v23 = vrot.slane %v58_v20, %v77_v18 }
  0xbd   :  { %v100_v25 = vsel %vm99_vm0, %v82_v22, %v78_v21 }
  0xbe   :  { %v102_v26 = vsel %vm101_vm1, %v86_v24, %v100_v25  ;;  %v60_v27 = vpop.xlane.xlu0 %59 }
  0xbf   :  { %v62_v28 = vpop.xlane.xlu1 %61  ;;  %v104_v29 = vsel %vm103_vm2, %v90_v23, %v102_v26  ;;  %v94_v30 = vrot.slane %v60_v27, %v77_v18 }
  0xc0   :  { %v98_v31 = vrot.slane %v62_v28, %v77_v18 }
  0xc1   :  { %v106_v34 = vsel %vm105_vm4, %v94_v30, %v104_v29 }
  0xc2   :  { %v108_v35 = vsel %vm107_vm5, %v98_v31, %v106_v34 }
  0xc3   :  { %v110_v36 = vmul.f32 %v108_v35, %v66_v33 }
  0xc5   :  { %v112_v37 = vand.u32 2147483647, %v110_v36  ;;  %v111_v48 = vmin.f32 %v110_v36, 0.0 }
  0xc7   :  { %v113_v38 = vsub.f32 0.0, %v112_v37 }
  0xc9   :  { %v114_v39 = vmul.f32 1.442695, %v113_v38 }
  0xcb   :  { %158 = vpow2.f32 %v114_v39 }
  0xd5   :  { %v159_v40 = vpop.eup %158 }
  0xd6   :  { %v116_v41 = vadd.f32 1.0, %v159_v40  ;;  %v119_v42 = vmul.f32 -0.5, %v159_v40  ;;  %v122_v44 = vand.u32 2147483647, %v159_v40 }
  0xd8   :  { %160 = vlog2.f32 %v116_v41  ;;  %v120_v43 = vadd.f32 1.0, %v119_v42  ;;  %vm123_vm6 = vcmp.lt.f32.partialorder %v122_v44, 0.0004427343 }
  0xda   :  { %v121_v47 = vmul.f32 %v159_v40, %v120_v43 }
  0xe2   :  { %v161_v45 = vpop.eup %160 }
  0xe3   :  { %v118_v46 = vmul.f32 0.6931472, %v161_v45 }
  0xe5   :  { %v124_v49 = vsel %vm123_vm6, %v121_v47, %v118_v46 }
  0xe6   :  { %v125_v50 = vsub.f32 %v111_v48, %v124_v49 }
  0xe8   :  { %v127_v51 = vsel %vm126_vm7, %v125_v50, 0.0 }
  0xe9   :  { %v128_v52 = vrot.slane %v127_v51, 4 }
  0xeb   :  { %v129_v53 = vadd.f32 %v128_v52, %v127_v51 }
  0xed   :  { %v130_v54 = vrot.slane %v129_v53, 2 }
  0xef   :  { %v131_v55 = vadd.f32 %v130_v54, %v129_v53 }
  0xf1   :  { %v132_v56 = vrot.slane %v131_v55, 1 }
  0xf3   :  { %v133_v57 = vadd.f32 %v132_v56, %v131_v55 }
  0xf5   :  { %135 = vst.msk [vmem:[#allocation7] sm:$0x1] %vm134_vm8, %v133_v57 }
  0xf6   :  { %217 = shalt.err (!%p214_p6)
}
  0xf7   :  { %s218_s11 = scalar_lea.hbm %s300_s2, 16 }
  0xf8   :  { %p219_p7 = scmp.ne.s32.totalorder %s300_s2, %s218_s11  ;;  %p222_p8 = scmp.lt.u32.totalorder %s218_s11, %s300_s2 }
  0xfa   :  { %p224_p9 = pnand %p222_p8, %p219_p7 }
  0xfc   :  { %227 = shalt.err (!%p224_p9)
}
  0xfd   :  { %145 = dma.vmem_to_hbm [thread:$0]  %s143_s6, 16, %s300_s2, [#allocation4]  }
  0xfe   :  { %232 = dma.done.wait [#allocation4], 16  }
  0xff   :  { %233 = vsyncadd [#allocation4], 4294967280 }
 0x100   :  { %149 = vsyncpa [#allocation3], 1 }
 0x101   :  { %150 = vsyncpa [#allocation6], 1 }
 0x102   :  { %151 = vsyncpa [#allocation4], 1 }

</bundles_post_ra>
